<compile_context>
chip_gen: v5e
topology: v5e:2x2
jax: 0.10.0
libtpu: 0.0.40
codegen_flags: <defaults>
</compile_context>

<pallas_src>
import functools

import jax
import jax.numpy as jnp
from jax.experimental import pallas as pl
from jax.experimental.pallas import tpu as pltpu

BN_EPS = 1e-5
HIDDEN = 128


def _round_up(x, m):
    return ((x + m - 1) // m) * m


def _tile_rows(batch, target):
    """Batch-tile size: a multiple of 8, <= target (or the whole padded batch)."""
    tb = min(max(int(target), 8), _round_up(batch, 8))
    return max(8, (tb // 8) * 8)


def _value_net_kernel(x_ref,
                      w1_ref, w2_ref, w3_ref, bn_ref, b3_ref,
                      o_ref,
                      h1_buf, s1_ref, q1_ref, s2_ref, q2_ref,
                      *, n_rows, mxu_dtype, masked):
    phase = pl.program_id(0)
    tile = pl.program_id(1)
    n_tiles = pl.num_programs(1)
    tb = x_ref.shape[0]
    inv_n = jnp.float32(1.0 / n_rows)

    def mxu_dot(act, w_ref):
        # Activations cast to the MXU dtype at the dot; weights already stored
        # in mxu_dtype (wrapper-side one-time cast).  Always f32 accumulate.
        return jnp.dot(act.astype(mxu_dtype), w_ref[...],
                       preferred_element_type=jnp.float32)

    def accumulate(h, s_ref, q_ref):
        # Fused single-pass BN statistics (sum, sum-of-squares); pad rows from
        # wrapper-side batch padding are masked out so n_rows stays exact.
        if masked:
            rows = tile * tb + jax.lax.broadcasted_iota(jnp.int32, (tb, 1), 0)
            h = h * (rows < n_rows).astype(jnp.float32)
        s_ref[...] += jnp.sum(h, axis=0, keepdims=True)
        q_ref[...] += jnp.sum(h * h, axis=0, keepdims=True)

    def finalize(s_ref, q_ref, gamma, beta):
        # (sum, sumsq) -> fused affine: bn(h) = h * scale + shift.
        mean = s_ref[...] * inv_n
        # E[h^2] - mean^2 with f32 accumulators; clamp guards tiny negative
        # values from cancellation.
        # TODO(synk): Chan-style per-tile mean/M2 combine if |mean| >> std at
        # very large batch ever becomes a concern.
        var = jnp.maximum(q_ref[...] * inv_n - mean * mean, 0.0)
        scale = gamma * jax.lax.rsqrt(var + BN_EPS)
        s_ref[...] = scale
        q_ref[...] = beta - mean * scale

    def bn_relu(h, s_ref, q_ref):
        return jnp.maximum(h * s_ref[...] + q_ref[...], 0.0)

    # ---- phase 0: fc1 (bias dropped -- cancels through training-mode BN),
    #      stash h1, accumulate BN1 statistics ----
    @pl.when(phase == 0)
    def _phase0():
        @pl.when(tile == 0)
        def _():
            s1_ref[...] = jnp.zeros_like(s1_ref)
            q1_ref[...] = jnp.zeros_like(q1_ref)

        h1 = mxu_dot(x_ref[...], w1_ref)
        h1_buf[tile] = h1.astype(h1_buf.dtype)
        accumulate(h1, s1_ref, q1_ref)

        @pl.when(tile == n_tiles - 1)
        def _():
            bnp = bn_ref[...]
            finalize(s1_ref, q1_ref, bnp[0:1, :], bnp[1:2, :])

    # ---- phase 1: bn1+relu, fc2 (bias dropped), accumulate BN2 statistics.
    #      h2 is not stashed; it is recomputed in phase 2 ----
    @pl.when(phase == 1)
    def _phase1():
        @pl.when(tile == 0)
        def _():
            s2_ref[...] = jnp.zeros_like(s2_ref)
            q2_ref[...] = jnp.zeros_like(q2_ref)

        a1 = bn_relu(h1_buf[tile].astype(jnp.float32), s1_ref, q1_ref)
        h2 = mxu_dot(a1, w2_ref)
        accumulate(h2, s2_ref, q2_ref)

        @pl.when(tile == n_tiles - 1)
        def _():
            bnp = bn_ref[...]
            finalize(s2_ref, q2_ref, bnp[2:3, :], bnp[3:4, :])

    # ---- phase 2: recompute a1/h2, bn2+relu, fc3 + b3, tanh, store tile ----
    @pl.when(phase == 2)
    def _phase2():
        a1 = bn_relu(h1_buf[tile].astype(jnp.float32), s1_ref, q1_ref)
        h2 = mxu_dot(a1, w2_ref)
        a2 = bn_relu(h2, s2_ref, q2_ref)
        out = mxu_dot(a2, w3_ref) + b3_ref[...]
        # TODO(synk): repack the (tb, out_len) result into a lane-dense
        # (tb*out_len/128, 128) slab before the tanh/store (avoids masked
        # vst.msk stores and 16x wasted EUP tanh pushes) once Mosaic reshape
        # support for this pattern is confirmed.
        o_ref[...] = jnp.tanh(out).astype(o_ref.dtype)


def value_net_forward(x, params, *, block_rows=4096, mxu_dtype=jnp.bfloat16):
    """ValueNet forward pass as a single Pallas kernel.

    x: (B, in_len).  params: dict from init_params.
    block_rows: target batch-tile size (rows per grid step).
    mxu_dtype: dtype fed to the MXU (bf16 default; float32 for exact checks).
    """
    batch, in_len = x.shape
    hidden = params["w1"].shape[1]
    out_len = params["w3"].shape[1]

    tb = _tile_rows(batch, block_rows)
    padded = _round_up(batch, tb)
    n_tiles = padded // tb
    masked = padded != batch
    if masked:
        x = jnp.pad(x, ((0, padded - batch), (0, 0)))

    # bf16 stash halves the O(batch) VMEM footprint; keep f32 for the exact
    # path, and only use bf16 when the tile is aligned to the native bf16
    # (16,128) packing so the dynamic leading-dim scratch index stays aligned.
    stash_dtype = (jnp.bfloat16
                   if (mxu_dtype == jnp.bfloat16 and tb % 16 == 0)
                   else jnp.float32)

    # b1/b2 are intentionally NOT passed: a per-column constant added before
    # training-mode BatchNorm cancels exactly.
    bn_params = jnp.concatenate(
        [params["g1"], params["be1"], params["g2"], params["be2"]],
        axis=0).astype(jnp.float32)                       # (4, hidden)
    resident = [params["w1"].astype(mxu_dtype),
                params["w2"].astype(mxu_dtype),
                params["w3"].astype(mxu_dtype),
                bn_params,
                params["b3"].astype(jnp.float32)]

    vmem = pltpu.MemorySpace.VMEM
    const_map = lambda p, i: (0, 0)
    last = n_tiles - 1

    def x_map(p, i):
        # x is only consumed in phase 0; pin afterwards -> no refetch.
        return (jnp.where(p == 0, i, last), 0)

    def out_map(p, i):
        # Output only produced in phase 2; pin earlier -> no garbage flush.
        return (jnp.where(p == 2, i, 0), 0)

    in_specs = [pl.BlockSpec((tb, in_len), x_map, memory_space=vmem)]
    in_specs += [pl.BlockSpec(a.shape, const_map, memory_space=vmem)
                 for a in resident]
    out_specs = pl.BlockSpec((tb, out_len), out_map, memory_space=vmem)

    scratch_shapes = [
        pltpu.VMEM((n_tiles, tb, hidden), stash_dtype),   # h1 stash (all tiles)
        pltpu.VMEM((1, hidden), jnp.float32),             # BN1 sum   -> scale
        pltpu.VMEM((1, hidden), jnp.float32),             # BN1 sumsq -> shift
        pltpu.VMEM((1, hidden), jnp.float32),             # BN2 sum   -> scale
        pltpu.VMEM((1, hidden), jnp.float32),             # BN2 sumsq -> shift
    ]

    # VMEM budget: stash + resident params (x2 double-buffered windows) +
    # streaming x/out tiles (x2) + in-kernel f32 working set.  Cap is
    # generation-aware (~80% of physical VMEM per TensorCore).
    stash_bytes = padded * hidden * jnp.dtype(stash_dtype).itemsize
    param_bytes = 2 * sum(int(a.size) * a.dtype.itemsize for a in resident)
    tile_bytes = 2 * tb * (in_len * x.dtype.itemsize + out_len * 4)
    work_bytes = 8 * tb * hidden * 4
    est_bytes = stash_bytes + param_bytes + tile_bytes + work_bytes + 4 * hidden * 4
    vmem_limit = None
    if est_bytes > (10 << 20):
        try:
            cap = int(pltpu.get_tpu_info().vmem_capacity_bytes * 0.8)
        except Exception:
            cap = 48 << 20          # conservative (v7x-safe) fallback
        vmem_limit = int(min(est_bytes + est_bytes // 2 + (8 << 20), cap))

    kernel = functools.partial(_value_net_kernel, n_rows=batch,
                               mxu_dtype=mxu_dtype, masked=masked)

    out = pl.pallas_call(
        kernel,
        out_shape=jax.ShapeDtypeStruct((padded, out_len), jnp.float32),
        grid_spec=pltpu.PrefetchScalarGridSpec(
            num_scalar_prefetch=0,
            grid=(3, n_tiles),                    # (phase, batch tile)
            in_specs=in_specs,
            out_specs=out_specs,
            scratch_shapes=scratch_shapes),
        compiler_params=pltpu.CompilerParams(
            # Batch tiles share BN statistics through scratch -> sequential.
            dimension_semantics=("arbitrary", "arbitrary"),
            vmem_limit_bytes=vmem_limit),
    )(x, *resident)

    return out[:batch] if masked else out


def init_params(key, in_len, out_len, hidden=HIDDEN):
    """Deterministic synthetic init. Linear weights ~ PyTorch-style uniform,
    BatchNorm gamma=1, beta=0 (PyTorch defaults). Weights stored (in, out)."""
    ks = jax.random.split(key, 6)

    def lin(kw, kb, fan_in, fan_out):
        bound = 1.0 / jnp.sqrt(jnp.float32(fan_in))
        w = jax.random.uniform(kw, (fan_in, fan_out), jnp.float32, -bound, bound)
        b = jax.random.uniform(kb, (1, fan_out), jnp.float32, -bound, bound)
        return w, b

    w1, b1 = lin(ks[0], ks[1], in_len, hidden)
    w2, b2 = lin(ks[2], ks[3], hidden, hidden)
    w3, b3 = lin(ks[4], ks[5], hidden, out_len)

    return {
        "w1": w1, "b1": b1,
        "g1": jnp.ones((1, hidden), jnp.float32), "be1": jnp.zeros((1, hidden), jnp.float32),
        "w2": w2, "b2": b2,
        "g2": jnp.ones((1, hidden), jnp.float32), "be2": jnp.zeros((1, hidden), jnp.float32),
        "w3": w3, "b3": b3,
    }


def value_net_ref(x, params):
    """Pure-JAX reference matching the PyTorch forward (training-mode BN).
    Note: it INCLUDES b1/b2, validating that the kernel's bias-drop is exact."""
    def bn(h, g, be):
        m = jnp.mean(h, axis=0, keepdims=True)
        v = jnp.mean((h - m) ** 2, axis=0, keepdims=True)
        return (h - m) / jnp.sqrt(v + BN_EPS) * g + be

    h = jnp.maximum(bn(x @ params["w1"] + params["b1"], params["g1"], params["be1"]), 0.0)
    h = jnp.maximum(bn(h @ params["w2"] + params["b2"], params["g2"], params["be2"]), 0.0)
    return jnp.tanh(h @ params["w3"] + params["b3"])


if __name__ == "__main__":
    IN_LEN, OUT_LEN = 32, 8

    key = jax.random.PRNGKey(0)
    k_x, k_p, k_x2, k_x3 = jax.random.split(key, 4)
    params = init_params(k_p, IN_LEN, OUT_LEN)

    B = 16
    x = jax.random.normal(k_x, (B, IN_LEN), jnp.float32)
    ref = value_net_ref(x, params)

    # 1) Exact-semantics check: f32 MXU path, forced multi-tile grid (2x8 rows)
    #    so the cross-tile full-batch BN accumulation is exercised.
    out_f32 = jax.block_until_ready(
        value_net_forward(x, params, block_rows=8, mxu_dtype=jnp.float32))
    assert out_f32.shape == (B, OUT_LEN)
    assert jnp.allclose(out_f32, ref, atol=1e-4, rtol=1e-4), "f32 path mismatch"

    # 2) bf16 MXU, multi-tile (tb=8 -> f32 stash fallback path).
    out_bf16 = jax.block_until_ready(
        value_net_forward(x, params, block_rows=8))
    assert jnp.allclose(out_bf16, ref, atol=5e-2, rtol=5e-2), "bf16 path mismatch"

    # 3) Default tiling (single tile at this batch), bf16 MXU + bf16 stash.
    out_default = jax.block_until_ready(value_net_forward(x, params))
    assert jnp.allclose(out_default, ref, atol=5e-2, rtol=5e-2), "default path mismatch"

    # 4) bf16 stash + multi-tile path (tb=16, 2 tiles).
    B3 = 32
    x3 = jax.random.normal(k_x3, (B3, IN_LEN), jnp.float32)
    ref3 = value_net_ref(x3, params)
    out3 = jax.block_until_ready(value_net_forward(x3, params, block_rows=16))
    assert jnp.allclose(out3, ref3, atol=5e-2, rtol=5e-2), "bf16 stash path mismatch"

    # 5) Awkward batch -> wrapper padding + masked BN statistics, f32 exact.
    B2 = 13
    x2 = jax.random.normal(k_x2, (B2, IN_LEN), jnp.float32)
    ref2 = value_net_ref(x2, params)
    out2 = jax.block_until_ready(
        value_net_forward(x2, params, block_rows=8, mxu_dtype=jnp.float32))
    assert out2.shape == (B2, OUT_LEN)
    assert jnp.allclose(out2, ref2, atol=1e-4, rtol=1e-4), "masked/padded path mismatch"

    print("KERNEL_OK")
</pallas_src>

<mosaic_0001>
module attributes {stable_mosaic.version = 11 : i64} {
  func.func @_value_net_kernel(%arg0: i32, %arg1: i32, %arg2: memref<8x32xf32, #tpu.memory_space<vmem>>, %arg3: memref<32x128xf32, #tpu.memory_space<vmem>>, %arg4: memref<128x128xf32, #tpu.memory_space<vmem>>, %arg5: memref<128x8xf32, #tpu.memory_space<vmem>>, %arg6: memref<4x128xf32, #tpu.memory_space<vmem>>, %arg7: memref<1x8xf32, #tpu.memory_space<vmem>>, %arg8: memref<8x8xf32, #tpu.memory_space<vmem>>, %arg9: memref<2x8x128xf32, #tpu.memory_space<vmem>>, %arg10: memref<1x128xf32, #tpu.memory_space<vmem>>, %arg11: memref<1x128xf32, #tpu.memory_space<vmem>>, %arg12: memref<1x128xf32, #tpu.memory_space<vmem>>, %arg13: memref<1x128xf32, #tpu.memory_space<vmem>>) attributes {dimension_semantics = [#tpu.dimension_semantics<arbitrary>, #tpu.dimension_semantics<arbitrary>], iteration_bounds = array<i64: 3, 2>, scalar_prefetch = 0 : i64, scratch_operands = 5 : i64, tpu.core_type = #tpu.core_type<tc>, window_params = [{transform_indices = @transform_0, window_bounds = array<i64: 8, 32>}, {pipeline_mode = #tpu.pipeline_mode<synchronous>, transform_indices = @transform_1, window_bounds = array<i64: 32, 128>}, {pipeline_mode = #tpu.pipeline_mode<synchronous>, transform_indices = @transform_2, window_bounds = array<i64: 128, 128>}, {pipeline_mode = #tpu.pipeline_mode<synchronous>, transform_indices = @transform_3, window_bounds = array<i64: 128, 8>}, {pipeline_mode = #tpu.pipeline_mode<synchronous>, transform_indices = @transform_4, window_bounds = array<i64: 4, 128>}, {pipeline_mode = #tpu.pipeline_mode<synchronous>, transform_indices = @transform_5, window_bounds = array<i64: 1, 8>}, {transform_indices = @transform_6, window_bounds = array<i64: 8, 8>}]} {
    %c0_i32 = arith.constant 0 : i32
    %0 = arith.cmpi eq, %arg0, %c0_i32 : i32
    %1 = arith.extui %0 : i1 to i32
    %cst = arith.constant 6.250000e-02 : f32
    %c0_i32_0 = arith.constant 0 : i32
    %2 = arith.cmpi ne, %1, %c0_i32_0 : i32
    scf.if %2 {
      %c0_i32_4 = arith.constant 0 : i32
      %9 = arith.cmpi eq, %arg1, %c0_i32_4 : i32
      %10 = arith.extui %9 : i1 to i32
      %c0_i32_5 = arith.constant 0 : i32
      %11 = arith.cmpi ne, %10, %c0_i32_5 : i32
      scf.if %11 {
        %cst_24 = arith.constant 0.000000e+00 : f32
        %33 = vector.broadcast %cst_24 : f32 to vector<1x128xf32>
        %c0_25 = arith.constant 0 : index
        %c0_26 = arith.constant 0 : index
        %34 = vector.load %arg10[%c0_25, %c0_26] : memref<1x128xf32, #tpu.memory_space<vmem>>, vector<1x128xf32>
        tpu.vector_store %arg10[%c0_25, %c0_26], %33 {strides = array<i32>} : memref<1x128xf32, #tpu.memory_space<vmem>>, vector<1x128xf32>,
        %cst_27 = arith.constant 0.000000e+00 : f32
        %35 = vector.broadcast %cst_27 : f32 to vector<1x128xf32>
        %c0_28 = arith.constant 0 : index
        %c0_29 = arith.constant 0 : index
        %36 = vector.load %arg11[%c0_28, %c0_29] : memref<1x128xf32, #tpu.memory_space<vmem>>, vector<1x128xf32>
        tpu.vector_store %arg11[%c0_28, %c0_29], %35 {strides = array<i32>} : memref<1x128xf32, #tpu.memory_space<vmem>>, vector<1x128xf32>,
      } else {
      }
      %c0 = arith.constant 0 : index
      %c0_6 = arith.constant 0 : index
      %12 = vector.load %arg2[%c0, %c0_6] : memref<8x32xf32, #tpu.memory_space<vmem>>, vector<8x32xf32>
      %c0_7 = arith.constant 0 : index
      %c0_8 = arith.constant 0 : index
      %13 = vector.load %arg3[%c0_7, %c0_8] : memref<32x128xf32, #tpu.memory_space<vmem>>, vector<32x128xf32>
      %cst_9 = arith.constant dense<0.000000e+00> : vector<8x128xf32>
      %14 = tpu.matmul %12, %13, %cst_9 {dimension_numbers = #tpu.dot_dimension_numbers<[1], [0], [0], [1], [0, 0, 1, 1], [], []>} : vector<8x32xf32>, vector<32x128xf32>, vector<8x128xf32> -> vector<8x128xf32>
      %15 = arith.index_cast %arg1 : i32 to index
      %c0_10 = arith.constant 0 : index
      %c0_11 = arith.constant 0 : index
      %16 = vector.load %arg9[%15, %c0_10, %c0_11] : memref<2x8x128xf32, #tpu.memory_space<vmem>>, vector<1x8x128xf32>
      %17 = vector.shape_cast %16 : vector<1x8x128xf32> to vector<8x128xf32>
      %18 = vector.shape_cast %14 : vector<8x128xf32> to vector<1x8x128xf32>
      tpu.vector_store %arg9[%15, %c0_10, %c0_11], %18 {strides = array<i32>} : memref<2x8x128xf32, #tpu.memory_space<vmem>>, vector<1x8x128xf32>,
      %c0_12 = arith.constant 0 : index
      %c0_13 = arith.constant 0 : index
      %19 = vector.load %arg10[%c0_12, %c0_13] : memref<1x128xf32, #tpu.memory_space<vmem>>, vector<1x128xf32>
      %cst_14 = arith.constant dense<0.000000e+00> : vector<128xf32>
      %20 = vector.multi_reduction <add>, %14, %cst_14 [0] : vector<8x128xf32> to vector<128xf32>
      %21 = vector.shape_cast %20 : vector<128xf32> to vector<1x128xf32>
      %22 = arith.addf %19, %21 : vector<1x128xf32>
      %c0_15 = arith.constant 0 : index
      %c0_16 = arith.constant 0 : index
      %23 = vector.load %arg10[%c0_15, %c0_16] : memref<1x128xf32, #tpu.memory_space<vmem>>, vector<1x128xf32>
      tpu.vector_store %arg10[%c0_15, %c0_16], %22 {strides = array<i32>} : memref<1x128xf32, #tpu.memory_space<vmem>>, vector<1x128xf32>,
      %c0_17 = arith.constant 0 : index
      %c0_18 = arith.constant 0 : index
      %24 = vector.load %arg11[%c0_17, %c0_18] : memref<1x128xf32, #tpu.memory_space<vmem>>, vector<1x128xf32>
      %25 = arith.mulf %14, %14 : vector<8x128xf32>
      %cst_19 = arith.constant dense<0.000000e+00> : vector<128xf32>
      %26 = vector.multi_reduction <add>, %25, %cst_19 [0] : vector<8x128xf32> to vector<128xf32>
      %27 = vector.shape_cast %26 : vector<128xf32> to vector<1x128xf32>
      %28 = arith.addf %24, %27 : vector<1x128xf32>
      %c0_20 = arith.constant 0 : index
      %c0_21 = arith.constant 0 : index
      %29 = vector.load %arg11[%c0_20, %c0_21] : memref<1x128xf32, #tpu.memory_space<vmem>>, vector<1x128xf32>
      tpu.vector_store %arg11[%c0_20, %c0_21], %28 {strides = array<i32>} : memref<1x128xf32, #tpu.memory_space<vmem>>, vector<1x128xf32>,
      %c1_i32_22 = arith.constant 1 : i32
      %30 = arith.cmpi eq, %arg1, %c1_i32_22 : i32
      %31 = arith.extui %30 : i1 to i32
      %c0_i32_23 = arith.constant 0 : i32
      %32 = arith.cmpi ne, %31, %c0_i32_23 : i32
      scf.if %32 {
        %c0_24 = arith.constant 0 : index
        %c0_25 = arith.constant 0 : index
        %33 = vector.load %arg6[%c0_24, %c0_25] : memref<4x128xf32, #tpu.memory_space<vmem>>, vector<4x128xf32>
        %34 = vector.extract_strided_slice %33 {offsets = [0, 0], sizes = [1, 128], strides = [1, 1]} : vector<4x128xf32> to vector<1x128xf32>
        %35 = vector.extract_strided_slice %33 {offsets = [1, 0], sizes = [1, 128], strides = [1, 1]} : vector<4x128xf32> to vector<1x128xf32>
        %c0_26 = arith.constant 0 : index
        %c0_27 = arith.constant 0 : index
        %36 = vector.load %arg10[%c0_26, %c0_27] : memref<1x128xf32, #tpu.memory_space<vmem>>, vector<1x128xf32>
        %37 = vector.broadcast %cst : f32 to vector<1x128xf32>
        %38 = arith.mulf %36, %37 : vector<1x128xf32>
        %c0_28 = arith.constant 0 : index
        %c0_29 = arith.constant 0 : index
        %39 = vector.load %arg11[%c0_28, %c0_29] : memref<1x128xf32, #tpu.memory_space<vmem>>, vector<1x128xf32>
        %40 = vector.broadcast %cst : f32 to vector<1x128xf32>
        %41 = arith.mulf %39, %40 : vector<1x128xf32>
        %42 = arith.mulf %38, %38 : vector<1x128xf32>
        %43 = arith.subf %41, %42 : vector<1x128xf32>
        %cst_30 = arith.constant 0.000000e+00 : f32
        %44 = vector.broadcast %cst_30 : f32 to vector<1x128xf32>
        %45 = arith.maximumf %43, %44 : vector<1x128xf32>
        %cst_31 = arith.constant 9.99999974E-6 : f32
        %46 = vector.broadcast %cst_31 : f32 to vector<1x128xf32>
        %47 = arith.addf %45, %46 : vector<1x128xf32>
        %48 = math.rsqrt %47 : vector<1x128xf32>
        %49 = arith.mulf %34, %48 : vector<1x128xf32>
        %c0_32 = arith.constant 0 : index
        %c0_33 = arith.constant 0 : index
        %50 = vector.load %arg10[%c0_32, %c0_33] : memref<1x128xf32, #tpu.memory_space<vmem>>, vector<1x128xf32>
        tpu.vector_store %arg10[%c0_32, %c0_33], %49 {strides = array<i32>} : memref<1x128xf32, #tpu.memory_space<vmem>>, vector<1x128xf32>,
        %51 = arith.mulf %38, %49 : vector<1x128xf32>
        %52 = arith.subf %35, %51 : vector<1x128xf32>
        %c0_34 = arith.constant 0 : index
        %c0_35 = arith.constant 0 : index
        %53 = vector.load %arg11[%c0_34, %c0_35] : memref<1x128xf32, #tpu.memory_space<vmem>>, vector<1x128xf32>
        tpu.vector_store %arg11[%c0_34, %c0_35], %52 {strides = array<i32>} : memref<1x128xf32, #tpu.memory_space<vmem>>, vector<1x128xf32>,
      } else {
      }
    } else {
    }
    %c1_i32 = arith.constant 1 : i32
    %3 = arith.cmpi eq, %arg0, %c1_i32 : i32
    %4 = arith.extui %3 : i1 to i32
    %cst_1 = arith.constant 6.250000e-02 : f32
    %c0_i32_2 = arith.constant 0 : i32
    %5 = arith.cmpi ne, %4, %c0_i32_2 : i32
    scf.if %5 {
      %c0_i32_4 = arith.constant 0 : i32
      %9 = arith.cmpi eq, %arg1, %c0_i32_4 : i32
      %10 = arith.extui %9 : i1 to i32
      %c0_i32_5 = arith.constant 0 : i32
      %11 = arith.cmpi ne, %10, %c0_i32_5 : i32
      scf.if %11 {
        %cst_27 = arith.constant 0.000000e+00 : f32
        %39 = vector.broadcast %cst_27 : f32 to vector<1x128xf32>
        %c0_28 = arith.constant 0 : index
        %c0_29 = arith.constant 0 : index
        %40 = vector.load %arg12[%c0_28, %c0_29] : memref<1x128xf32, #tpu.memory_space<vmem>>, vector<1x128xf32>
        tpu.vector_store %arg12[%c0_28, %c0_29], %39 {strides = array<i32>} : memref<1x128xf32, #tpu.memory_space<vmem>>, vector<1x128xf32>,
        %cst_30 = arith.constant 0.000000e+00 : f32
        %41 = vector.broadcast %cst_30 : f32 to vector<1x128xf32>
        %c0_31 = arith.constant 0 : index
        %c0_32 = arith.constant 0 : index
        %42 = vector.load %arg13[%c0_31, %c0_32] : memref<1x128xf32, #tpu.memory_space<vmem>>, vector<1x128xf32>
        tpu.vector_store %arg13[%c0_31, %c0_32], %41 {strides = array<i32>} : memref<1x128xf32, #tpu.memory_space<vmem>>, vector<1x128xf32>,
      } else {
      }
      %12 = arith.index_cast %arg1 : i32 to index
      %c0 = arith.constant 0 : index
      %c0_6 = arith.constant 0 : index
      %13 = vector.load %arg9[%12, %c0, %c0_6] : memref<2x8x128xf32, #tpu.memory_space<vmem>>, vector<1x8x128xf32>
      %14 = vector.shape_cast %13 : vector<1x8x128xf32> to vector<8x128xf32>
      %c0_7 = arith.constant 0 : index
      %c0_8 = arith.constant 0 : index
      %15 = vector.load %arg10[%c0_7, %c0_8] : memref<1x128xf32, #tpu.memory_space<vmem>>, vector<1x128xf32>
      %16 = vector.broadcast %15 : vector<1x128xf32> to vector<8x128xf32>
      %17 = arith.mulf %14, %16 : vector<8x128xf32>
      %c0_9 = arith.constant 0 : index
      %c0_10 = arith.constant 0 : index
      %18 = vector.load %arg11[%c0_9, %c0_10] : memref<1x128xf32, #tpu.memory_space<vmem>>, vector<1x128xf32>
      %19 = vector.broadcast %18 : vector<1x128xf32> to vector<8x128xf32>
      %20 = arith.addf %17, %19 : vector<8x128xf32>
      %cst_11 = arith.constant 0.000000e+00 : f32
      %21 = vector.broadcast %cst_11 : f32 to vector<8x128xf32>
      %22 = arith.maximumf %20, %21 : vector<8x128xf32>
      %c0_12 = arith.constant 0 : index
      %c0_13 = arith.constant 0 : index
      %23 = vector.load %arg4[%c0_12, %c0_13] : memref<128x128xf32, #tpu.memory_space<vmem>>, vector<128x128xf32>
      %cst_14 = arith.constant dense<0.000000e+00> : vector<8x128xf32>
      %24 = tpu.matmul %22, %23, %cst_14 {dimension_numbers = #tpu.dot_dimension_numbers<[1], [0], [0], [1], [0, 0, 1, 1], [], []>} : vector<8x128xf32>, vector<128x128xf32>, vector<8x128xf32> -> vector<8x128xf32>
      %c0_15 = arith.constant 0 : index
      %c0_16 = arith.constant 0 : index
      %25 = vector.load %arg12[%c0_15, %c0_16] : memref<1x128xf32, #tpu.memory_space<vmem>>, vector<1x128xf32>
      %cst_17 = arith.constant dense<0.000000e+00> : vector<128xf32>
      %26 = vector.multi_reduction <add>, %24, %cst_17 [0] : vector<8x128xf32> to vector<128xf32>
      %27 = vector.shape_cast %26 : vector<128xf32> to vector<1x128xf32>
      %28 = arith.addf %25, %27 : vector<1x128xf32>
      %c0_18 = arith.constant 0 : index
      %c0_19 = arith.constant 0 : index
      %29 = vector.load %arg12[%c0_18, %c0_19] : memref<1x128xf32, #tpu.memory_space<vmem>>, vector<1x128xf32>
      tpu.vector_store %arg12[%c0_18, %c0_19], %28 {strides = array<i32>} : memref<1x128xf32, #tpu.memory_space<vmem>>, vector<1x128xf32>,
      %c0_20 = arith.constant 0 : index
      %c0_21 = arith.constant 0 : index
      %30 = vector.load %arg13[%c0_20, %c0_21] : memref<1x128xf32, #tpu.memory_space<vmem>>, vector<1x128xf32>
      %31 = arith.mulf %24, %24 : vector<8x128xf32>
      %cst_22 = arith.constant dense<0.000000e+00> : vector<128xf32>
      %32 = vector.multi_reduction <add>, %31, %cst_22 [0] : vector<8x128xf32> to vector<128xf32>
      %33 = vector.shape_cast %32 : vector<128xf32> to vector<1x128xf32>
      %34 = arith.addf %30, %33 : vector<1x128xf32>
      %c0_23 = arith.constant 0 : index
      %c0_24 = arith.constant 0 : index
      %35 = vector.load %arg13[%c0_23, %c0_24] : memref<1x128xf32, #tpu.memory_space<vmem>>, vector<1x128xf32>
      tpu.vector_store %arg13[%c0_23, %c0_24], %34 {strides = array<i32>} : memref<1x128xf32, #tpu.memory_space<vmem>>, vector<1x128xf32>,
      %c1_i32_25 = arith.constant 1 : i32
      %36 = arith.cmpi eq, %arg1, %c1_i32_25 : i32
      %37 = arith.extui %36 : i1 to i32
      %c0_i32_26 = arith.constant 0 : i32
      %38 = arith.cmpi ne, %37, %c0_i32_26 : i32
      scf.if %38 {
        %c0_27 = arith.constant 0 : index
        %c0_28 = arith.constant 0 : index
        %39 = vector.load %arg6[%c0_27, %c0_28] : memref<4x128xf32, #tpu.memory_space<vmem>>, vector<4x128xf32>
        %40 = vector.extract_strided_slice %39 {offsets = [2, 0], sizes = [1, 128], strides = [1, 1]} : vector<4x128xf32> to vector<1x128xf32>
        %41 = vector.extract_strided_slice %39 {offsets = [3, 0], sizes = [1, 128], strides = [1, 1]} : vector<4x128xf32> to vector<1x128xf32>
        %c0_29 = arith.constant 0 : index
        %c0_30 = arith.constant 0 : index
        %42 = vector.load %arg12[%c0_29, %c0_30] : memref<1x128xf32, #tpu.memory_space<vmem>>, vector<1x128xf32>
        %43 = vector.broadcast %cst_1 : f32 to vector<1x128xf32>
        %44 = arith.mulf %42, %43 : vector<1x128xf32>
        %c0_31 = arith.constant 0 : index
        %c0_32 = arith.constant 0 : index
        %45 = vector.load %arg13[%c0_31, %c0_32] : memref<1x128xf32, #tpu.memory_space<vmem>>, vector<1x128xf32>
        %46 = vector.broadcast %cst_1 : f32 to vector<1x128xf32>
        %47 = arith.mulf %45, %46 : vector<1x128xf32>
        %48 = arith.mulf %44, %44 : vector<1x128xf32>
        %49 = arith.subf %47, %48 : vector<1x128xf32>
        %cst_33 = arith.constant 0.000000e+00 : f32
        %50 = vector.broadcast %cst_33 : f32 to vector<1x128xf32>
        %51 = arith.maximumf %49, %50 : vector<1x128xf32>
        %cst_34 = arith.constant 9.99999974E-6 : f32
        %52 = vector.broadcast %cst_34 : f32 to vector<1x128xf32>
        %53 = arith.addf %51, %52 : vector<1x128xf32>
        %54 = math.rsqrt %53 : vector<1x128xf32>
        %55 = arith.mulf %40, %54 : vector<1x128xf32>
        %c0_35 = arith.constant 0 : index
        %c0_36 = arith.constant 0 : index
        %56 = vector.load %arg12[%c0_35, %c0_36] : memref<1x128xf32, #tpu.memory_space<vmem>>, vector<1x128xf32>
        tpu.vector_store %arg12[%c0_35, %c0_36], %55 {strides = array<i32>} : memref<1x128xf32, #tpu.memory_space<vmem>>, vector<1x128xf32>,
        %57 = arith.mulf %44, %55 : vector<1x128xf32>
        %58 = arith.subf %41, %57 : vector<1x128xf32>
        %c0_37 = arith.constant 0 : index
        %c0_38 = arith.constant 0 : index
        %59 = vector.load %arg13[%c0_37, %c0_38] : memref<1x128xf32, #tpu.memory_space<vmem>>, vector<1x128xf32>
        tpu.vector_store %arg13[%c0_37, %c0_38], %58 {strides = array<i32>} : memref<1x128xf32, #tpu.memory_space<vmem>>, vector<1x128xf32>,
      } else {
      }
    } else {
    }
    %c2_i32 = arith.constant 2 : i32
    %6 = arith.cmpi eq, %arg0, %c2_i32 : i32
    %7 = arith.extui %6 : i1 to i32
    %c0_i32_3 = arith.constant 0 : i32
    %8 = arith.cmpi ne, %7, %c0_i32_3 : i32
    scf.if %8 {
      %9 = arith.index_cast %arg1 : i32 to index
      %c0 = arith.constant 0 : index
      %c0_4 = arith.constant 0 : index
      %10 = vector.load %arg9[%9, %c0, %c0_4] : memref<2x8x128xf32, #tpu.memory_space<vmem>>, vector<1x8x128xf32>
      %11 = vector.shape_cast %10 : vector<1x8x128xf32> to vector<8x128xf32>
      %c0_5 = arith.constant 0 : index
      %c0_6 = arith.constant 0 : index
      %12 = vector.load %arg10[%c0_5, %c0_6] : memref<1x128xf32, #tpu.memory_space<vmem>>, vector<1x128xf32>
      %13 = vector.broadcast %12 : vector<1x128xf32> to vector<8x128xf32>
      %14 = arith.mulf %11, %13 : vector<8x128xf32>
      %c0_7 = arith.constant 0 : index
      %c0_8 = arith.constant 0 : index
      %15 = vector.load %arg11[%c0_7, %c0_8] : memref<1x128xf32, #tpu.memory_space<vmem>>, vector<1x128xf32>
      %16 = vector.broadcast %15 : vector<1x128xf32> to vector<8x128xf32>
      %17 = arith.addf %14, %16 : vector<8x128xf32>
      %cst_9 = arith.constant 0.000000e+00 : f32
      %18 = vector.broadcast %cst_9 : f32 to vector<8x128xf32>
      %19 = arith.maximumf %17, %18 : vector<8x128xf32>
      %c0_10 = arith.constant 0 : index
      %c0_11 = arith.constant 0 : index
      %20 = vector.load %arg4[%c0_10, %c0_11] : memref<128x128xf32, #tpu.memory_space<vmem>>, vector<128x128xf32>
      %cst_12 = arith.constant dense<0.000000e+00> : vector<8x128xf32>
      %21 = tpu.matmul %19, %20, %cst_12 {dimension_numbers = #tpu.dot_dimension_numbers<[1], [0], [0], [1], [0, 0, 1, 1], [], []>} : vector<8x128xf32>, vector<128x128xf32>, vector<8x128xf32> -> vector<8x128xf32>
      %c0_13 = arith.constant 0 : index
      %c0_14 = arith.constant 0 : index
      %22 = vector.load %arg12[%c0_13, %c0_14] : memref<1x128xf32, #tpu.memory_space<vmem>>, vector<1x128xf32>
      %23 = vector.broadcast %22 : vector<1x128xf32> to vector<8x128xf32>
      %24 = arith.mulf %21, %23 : vector<8x128xf32>
      %c0_15 = arith.constant 0 : index
      %c0_16 = arith.constant 0 : index
      %25 = vector.load %arg13[%c0_15, %c0_16] : memref<1x128xf32, #tpu.memory_space<vmem>>, vector<1x128xf32>
      %26 = vector.broadcast %25 : vector<1x128xf32> to vector<8x128xf32>
      %27 = arith.addf %24, %26 : vector<8x128xf32>
      %cst_17 = arith.constant 0.000000e+00 : f32
      %28 = vector.broadcast %cst_17 : f32 to vector<8x128xf32>
      %29 = arith.maximumf %27, %28 : vector<8x128xf32>
      %c0_18 = arith.constant 0 : index
      %c0_19 = arith.constant 0 : index
      %30 = vector.load %arg5[%c0_18, %c0_19] : memref<128x8xf32, #tpu.memory_space<vmem>>, vector<128x8xf32>
      %cst_20 = arith.constant dense<0.000000e+00> : vector<8x8xf32>
      %31 = tpu.matmul %29, %30, %cst_20 {dimension_numbers = #tpu.dot_dimension_numbers<[1], [0], [0], [1], [0, 0, 1, 1], [], []>} : vector<8x128xf32>, vector<128x8xf32>, vector<8x8xf32> -> vector<8x8xf32>
      %c0_21 = arith.constant 0 : index
      %c0_22 = arith.constant 0 : index
      %32 = vector.load %arg7[%c0_21, %c0_22] : memref<1x8xf32, #tpu.memory_space<vmem>>, vector<1x8xf32>
      %33 = vector.broadcast %32 : vector<1x8xf32> to vector<8x8xf32>
      %34 = arith.addf %31, %33 : vector<8x8xf32>
      %35 = math.tanh %34 : vector<8x8xf32>
      %c0_23 = arith.constant 0 : index
      %c0_24 = arith.constant 0 : index
      %36 = vector.load %arg8[%c0_23, %c0_24] : memref<8x8xf32, #tpu.memory_space<vmem>>, vector<8x8xf32>
      tpu.vector_store %arg8[%c0_23, %c0_24], %35 {strides = array<i32>} : memref<8x8xf32, #tpu.memory_space<vmem>>, vector<8x8xf32>,
    } else {
    }
    return
  }
  func.func @transform_0(%arg0: i32, %arg1: i32) -> (i32, i32) {
    %c0_i32 = arith.constant 0 : i32
    %0 = arith.cmpi eq, %arg0, %c0_i32 : i32
    %c1_i32 = arith.constant 1 : i32
    %1 = arith.select %0, %arg1, %c1_i32 : i32
    %c0_i32_0 = arith.constant 0 : i32
    %c0_i32_1 = arith.constant 0 : i32
    return %1, %c0_i32_0 : i32, i32
  }
  func.func @transform_1(%arg0: i32, %arg1: i32) -> (i32, i32) {
    %c0_i32 = arith.constant 0 : i32
    %c0_i32_0 = arith.constant 0 : i32
    %c0_i32_1 = arith.constant 0 : i32
    return %c0_i32, %c0_i32_0 : i32, i32
  }
  func.func @transform_2(%arg0: i32, %arg1: i32) -> (i32, i32) {
    %c0_i32 = arith.constant 0 : i32
    %c0_i32_0 = arith.constant 0 : i32
    %c0_i32_1 = arith.constant 0 : i32
    return %c0_i32, %c0_i32_0 : i32, i32
  }
  func.func @transform_3(%arg0: i32, %arg1: i32) -> (i32, i32) {
    %c0_i32 = arith.constant 0 : i32
    %c0_i32_0 = arith.constant 0 : i32
    %c0_i32_1 = arith.constant 0 : i32
    return %c0_i32, %c0_i32_0 : i32, i32
  }
  func.func @transform_4(%arg0: i32, %arg1: i32) -> (i32, i32) {
    %c0_i32 = arith.constant 0 : i32
    %c0_i32_0 = arith.constant 0 : i32
    %c0_i32_1 = arith.constant 0 : i32
    return %c0_i32, %c0_i32_0 : i32, i32
  }
  func.func @transform_5(%arg0: i32, %arg1: i32) -> (i32, i32) {
    %c0_i32 = arith.constant 0 : i32
    %c0_i32_0 = arith.constant 0 : i32
    %c0_i32_1 = arith.constant 0 : i32
    return %c0_i32, %c0_i32_0 : i32, i32
  }
  func.func @transform_6(%arg0: i32, %arg1: i32) -> (i32, i32) {
    %c2_i32 = arith.constant 2 : i32
    %0 = arith.cmpi eq, %arg0, %c2_i32 : i32
    %c0_i32 = arith.constant 0 : i32
    %1 = arith.select %0, %arg1, %c0_i32 : i32
    %c0_i32_0 = arith.constant 0 : i32
    %c0_i32_1 = arith.constant 0 : i32
    return %1, %c0_i32_0 : i32, i32
  }
}

</mosaic_0001>

<bundles_post_ra>
// kernel: tpu_custom_call.1
= control target key start
LH: loop header
LB: loop body
LE: loop exit
PB: predicated region body
PF: predicated region fallthrough
CT: control target
= control target key end

     0   :  { %s1328_s0 = inlined_call_operand.hbm [shape: f32[16,32], index: 0, kind: input, shape index: {}]   ;;  %s1329_s1 = inlined_call_operand.hbm [shape: f32[32,128], index: 1, kind: input, shape index: {}]   ;;  %s1330_s2 = inlined_call_operand.vmem [shape: f32[128,128], index: 2, kind: input, shape index: {}]   ;;  %s1331_s3 = inlined_call_operand.vmem [shape: f32[128,8], index: 3, kind: input, shape index: {}]   ;;  %s1332_s4 = inlined_call_operand.vmem [shape: f32[4,128], index: 4, kind: input, shape index: {}]   ;;  %s1333_s5 = inlined_call_operand.vmem [shape: f32[1,8], index: 5, kind: input, shape index: {}]   ;;  %s1334_s6 = inlined_call_operand.vmem [shape: f32[16,8], index: 6, kind: output, shape index: {}]  }
   0x1   :  { %1338 = sst [smem:[#allocation16_spill]] %s1329_s1 }
   0x2   :  { %11 = vsyncpa [#allocation8], 0 }
   0x3   :  { %13 = vsyncpa [#allocation8 + $0x1], 0 }
   0x4   :  { %14 = vsyncpa [#allocation10], 0  ;;  %s1027_s21 = smov 0   ;;  %s1029_s22 = smov 0  }
   0x5   :  { %s1031_s23 = smov 0   ;;  %s1033_s24 = smov 0  }
   0x6   :  { %s1035_s25 = smov 0   ;;  %s1037_s26 = smov 0  }
   0x7   :  { %s1039_s27 = smov 0   ;;  %s1041_s28 = smov 0  }
   0x8 LB: > { %1339 = sst [smem:[#allocation13_spill]] %s977_s26  ;;  %s732_s29 = sadd.s32 4294967295, %s985_s28   ;;  %s985_s28 = sphi %s1041_s28, %s20_s28   ;;  %s981_s27 = sphi %s1039_s27, %s1349_s27   ;;  %s977_s26 = sphi %s1037_s26, %s1353_s26   ;;  %s973_s25 = sphi %s1035_s25, %s1348_s25   ;;  %s969_s24 = sphi %s1033_s24, %s1347_s24   ;;  %s965_s23 = sphi %s1031_s23, %s1352_s23   ;;  %s961_s22 = sphi %s1029_s22, %s1351_s22   ;;  %s957_s21 = sphi %s1027_s21, %s1350_s21  }
   0x9   : > { %1340 = sst [smem:[#allocation14_spill]] %s981_s27  ;;  %p734_p0 = scmp.ge.s32.totalorder %s985_s28, 1 }
   0xa   : > { %p1069_p1 = scmp.eq.s32.totalorder %s732_s29, 0  ;;  %p202_p2 = scmp.lt.s32.totalorder %s985_s28, 7 }
   0xb   : > { %s1342_s1 = sld [smem:[#allocation16_spill]]  ;;  %s987_s11 = smov [#allocation9]  }
   0xc   : > { %p1077_p3 = pnand %p734_p0, %p202_p2  ;;  %s215_s12 = sshll.u32 %s987_s11, 4  ;;  %s216_s12 = int_to_ptr.vmem [resolvable:$true] %s215_s12 }
   0xd   : > { %s988_s13 = smov 128   ;;  %s989_s14 = smov 8  }
   0xe   : > { %p762_p4 = pneg %p1077_p3  ;;  %s29_s15 = sadd.s32 1, %s977_s26 }
   0xf   : > { %p30_p6 = scmp.ge.s32.totalorder %s29_s15, 2  ;;  %s32_s16 = sadd.s32 1, %s981_s27 }
  0x10   : > { %p763_p5 = pnand %p762_p4, %p1069_p1  ;;  %p36_p7 = scmp.eq.s32.totalorder %s981_s27, 0 }
  0x11   : > { %s213_s9 = sshll.u32 %s1342_s1, 4  ;;  %s1355_s15 = smov (%p30_p6, %s29_s15), 0  ;;  %s214_s9 = int_to_ptr.hbm [resolvable:$true] %s213_s9 }
  0x12   : > { %765 = dma.hbm_to_vmem [thread:$0]  (!%p763_p5), %s214_s9, 512, %s216_s12, [#allocation10], %s988_s13, %s988_s13, %s989_s14  }
  0x13   : > { %s1357_s16 = smov (!%p30_p6, %s32_s16), %s981_s27  ;;  %p50_p9 = scmp.ne.s32.totalorder %s965_s23, %s961_s22 }
  0x14   : > { %s37_s17 = scalar_select %p36_p7, %s977_s26, 1 }
  0x15   : > { %p34_p8 = scmp.ge.s32.totalorder %s1357_s16, 3  ;;  %p51_p10 = scmp.eq.s32.totalorder %s985_s28, 0 }
  0x16   : > { %p56_p11 = scmp.ne.s32.totalorder %s961_s22, %s957_s21  ;;  %s43_s18 = sadd.s32 1, %s965_s23 }
  0x17   : > { %s1359_s16 = smov (%p34_p8, %s1357_s16), 0  ;;  %p1107_p0 = por %p51_p10, %p50_p9 }
  0x18   : > { %1344 = sst [smem:[#allocation15_spill]] %s1359_s16  ;;  %p1102_p12 = por %p1069_p1, %p56_p11 }
  0x19   : > { %p38_p13 = scmp.eq.s32.totalorder %s1359_s16, 0  ;;  %s241_s29 = sand.u32 1, %s965_s23  }
  0x1a   : > { %s738_s7 = sshll.u32 %s37_s17, 3  ;;  %p771_p2 = scmp.lt.s32.totalorder %s985_s28, 6 }
  0x1b   : > { %s39_s8 = scalar_select %p38_p13, %s1355_s15, 1 }
  0x1c   : > { %s737_s21 = sshll.u32 %s241_s29, 3  ;;  %s251_s13 = scalar_lea.hbm %s1328_s0, %s738_s7 }
  0x1d   : > { %s40_s9 = ssub.s32 %s37_s17, %s39_s8  ;;  %s253_s14 = sshll.u32 %s251_s13, 4  ;;  %s254_s14 = int_to_ptr.hbm [resolvable:$true] %s253_s14 }
  0x1e   : > { %p41_p4 = scmp.eq.s32.totalorder %s40_s9, 0  ;;  %s245_s1 = scalar_lea.vmem [#allocation7], %s737_s21 }
  0x1f   : > { %s255_s27 = sshll.u32 %s245_s1, 4  ;;  %p767_p5 = pnand %p771_p2, %p1107_p0  ;;  %s256_s27 = int_to_ptr.vmem [resolvable:$true] %s255_s27 }
  0x20   : > { %s1118_s16 = scalar_select %p41_p4, %s965_s23, %s43_s18  }
  0x21   : > { %s242_s26 = scalar_lea.sflag [#allocation8], %s241_s29  ;;  %264 = sbr.rel (%p1077_p3) target bundleno = 800 (0x320), region = 44 }
  0x22   : > { %769 = dma.hbm_to_vmem [thread:$0]  (!%p767_p5), %s254_s14, 128, %s256_s27, %s242_s26  }
  0x23   : > { %s266_s17 = sand.u32 (!%p1077_p3), 1, %s961_s22  }
  0x24   : > { %s740_s8 = sshll.u32 (!%p1077_p3), %s266_s17, 3  ;;  %s267_s9 = scalar_lea.sflag (!%p1077_p3), [#allocation8], %s266_s17 }
  0x25   : > { %s270_s7 = scalar_lea.vmem (!%p1077_p3), [#allocation7], %s740_s8 }
  0x26   : > { %948 = dma.done.wait (%p1102_p12), %s267_s9, 128  }
  0x27   : > { %950 = vsyncadd (%p1102_p12), %s267_s9, 4294967168 }
  0x28   : > { %952 = dma.done.wait (%p1069_p1), [#allocation10], 512  }
  0x29   : > { %954 = vsyncadd (%p1069_p1), [#allocation10], 4294966784  ;;  %p308_p3 = scmp.eq.s32.totalorder %s973_s25, 2  ;;  %p743_p7 = scmp.ne.s32.totalorder %s973_s25, 0 }
  0x2a   : > { %p744_p8 = scmp.ne.s32.totalorder (!%p743_p7), %s969_s24, 0 }
  0x2b   : > { %s309_s1 = scalar_select %p308_p3, %s969_s24, 0 }
  0x2d   : > { %p310_p6 = scmp.lt.s32.totalorder %s309_s1, 1  ;;  %319 = sbr.rel (%p743_p7) target bundleno = 251 (0xfb), region = 56 }
  0x2f   : > { %s1361_s1 = smov (!%p310_p6, %s309_s1), 1 }
  0x30   : > { %s742_s26 = sshll.u32 %s1361_s1, 3 }
  0x31   : > { %s1138_s18 = scalar_lea.vmem %s1334_s6, %s742_s26 }
  0x32   : > { %323 = sbr.rel (%p744_p8) target bundleno = 58 (0x3a), region = 60 }
  0x37   : > { %v990_v0 = vmov 0.0  }
  0x38   : > { %324 = vst [vmem:[#allocation3] sm:$0x1] %v990_v0 }
  0x39   : > { %325 = vst [vmem:[#allocation4] sm:$0x1] %v990_v0 }
  0x3a PF: > { %v330_v1 = vld [vmem:[#allocation9 + $0x18] sm:$0xff]  ;;  %v329_v2 = vld [vmem:[#allocation9 + $0x10] sm:$0xff]  ;;  %v328_v3 = vld [vmem:[#allocation9 + $0x8] sm:$0xff]  ;;  %vm331_vm0 = vcmask 261120   ;;  %s746_s30 = sshll.u32 %s969_s24, 3  ;;  %p747_p1 = scmp.ne.s32.totalorder %s969_s24, 1 }
  0x3b   : > { %347 = vmatpush.msra.mxu0 %v330_v1  ;;  %v327_v4 = vld [vmem:[#allocation9] sm:$0xff]  ;;  %v326_v5 = vld [vmem:[%s270_s7] sm:$0xff]  ;;  %s356_s19 = scalar_lea.vmem [#allocation2], %s746_s30 }
  0x3d   : > { %348 = vmatpush.msra.mxu0 %v329_v2 }
  0x3f   : > { %349 = vmatpush.msra.mxu0 %v328_v3  ;;  %v358_v17 = vld [vmem:[#allocation3] sm:$0x1] }
  0x40   : > { %v367_v20 = vld [vmem:[#allocation4] sm:$0x1] }
  0x41   : > { %350 = vmatpush.msra.mxu0 %v327_v4 }
  0x42   : > { %745 = vmatmul.msk.f32.vlgmr.msra.gmra.mxu0 %vm331_vm0, %v326_v5 }
  0xbf   : > { %v352_v6 = vpop.f32.mrf.mxu0 }
  0xc0   : > { %357 = vst [vmem:[%s356_s19] sm:$0xff] %v352_v6  ;;  %v359_v7 = vrot.slane %v352_v6, 4  ;;  %v368_v8 = vmul.f32 %v352_v6, %v352_v6 }
  0xc2   : > { %v360_v9 = vadd.f32 %v359_v7, %v352_v6  ;;  %v369_v10 = vrot.slane %v368_v8, 4 }
  0xc4   : > { %v361_v11 = vrot.slane %v360_v9, 2  ;;  %v370_v12 = vadd.f32 %v369_v10, %v368_v8 }
  0xc6   : > { %v362_v13 = vadd.f32 %v361_v11, %v360_v9  ;;  %v371_v14 = vrot.slane %v370_v12, 2 }
  0xc8   : > { %v363_v15 = vrot.slane %v362_v13, 1  ;;  %v372_v16 = vadd.f32 %v371_v14, %v370_v12 }
  0xca   : > { %v364_v18 = vadd.f32 %v363_v15, %v362_v13  ;;  %v373_v19 = vrot.slane %v372_v16, 1 }
  0xcc   : > { %v365_v21 = vadd.f32 %v364_v18, %v358_v17  ;;  %v374_v22 = vadd.f32 %v373_v19, %v372_v16  ;;  %380 = sbr.rel (%p747_p1) target bundleno = 251 (0xfb), region = 64 }
  0xce   : > { %366 = vst [vmem:[#allocation3] sm:$0x1] %v365_v21  ;;  %v375_v23 = vadd.f32 %v374_v22, %v367_v20 }
  0xd0   : > { %376 = vst [vmem:[#allocation4] sm:$0x1] %v375_v23 }
  0xd1   : > { %v381_v37 = vld [vmem:[%s1332_s4] sm:$0xf] }
  0xd5   : > { %v382_v24 = vld [vmem:[#allocation3] sm:$0x1] }
  0xd6   : > { %v383_v26 = vmul.f32 0.0625, %v382_v24 }
  0xd7   : > { %v384_v25 = vld [vmem:[#allocation4] sm:$0x1] }
  0xd8   : > { %v385_v27 = vmul.f32 0.0625, %v384_v25  ;;  %v386_v28 = vmul.f32 %v383_v26, %v383_v26 }
  0xda   : > { %v387_v29 = vsub.f32 %v385_v27, %v386_v28 }
  0xdc   : > { %v388_v30 = vmax.f32 %v387_v29, 0.0 }
  0xde   : > { %v389_v31 = vadd.f32 1e-05, %v388_v30 }
  0xe0   : > { %842 = vrsqrt.f32 %v389_v31  ;;  %vm396_vm1 = vweird.f32 %v389_v31 }
  0xe6   : > { %v843_v32 = vpop.eup %842 }
  0xe7   : > { %v391_v33 = vmul.f32 %v843_v32, %v389_v31  ;;  %vm397_vm2 = vweird.f32 %v843_v32 }
  0xe8   : > { %vm398_vm3 = vmor %vm396_vm1, %vm397_vm2 }
  0xe9   : > { %v392_v34 = vmul.f32 %v843_v32, %v391_v33 }
  0xeb   : > { %v393_v35 = vmul.f32 0.5, %v392_v34 }
  0xed   : > { %v394_v36 = vsub.f32 1.5, %v393_v35 }
  0xef   : > { %v395_v38 = vmul.f32 %v843_v32, %v394_v36 }
  0xf1   : > { %v399_v39 = vsel %vm398_vm3, %v843_v32, %v395_v38 }
  0xf2   : > { %v400_v40 = vmul.f32 %v399_v39, %v381_v37 }
  0xf4   : > { %401 = vst [vmem:[#allocation3] sm:$0x1] %v400_v40  ;;  %v402_v41 = vmul.f32 %v400_v40, %v383_v26 }
  0xf6   : > { %v404_v42 = vperm.slane %v402_v41, 0 }
  0xf8   : > { %v406_v43 = vsub.f32 %v381_v37, %v404_v42 }
  0xfa   : > { %407 = vst [vmem:[#allocation4 - $0x1] sm:$0x2] %v406_v43 }
  0xfb PF: > { %p748_p9 = scmp.ne.s32.totalorder %s973_s25, 1 }
  0xfc   : > { %p749_p10 = scmp.ne.s32.totalorder (!%p748_p9), %s969_s24, 0 }
  0xfd   : > { %411 = sbr.rel (%p748_p9) target bundleno = 493 (0x1ed), region = 68 }
 0x102   : > { %415 = sbr.rel (%p749_p10) target bundleno = 266 (0x10a), region = 72 }
 0x107   : > { %v991_v44 = vmov 0.0  }
 0x108   : > { %416 = vst [vmem:[#allocation5] sm:$0x1] %v991_v44 }
 0x109   : > { %417 = vst [vmem:[#allocation6] sm:$0x1] %v991_v44 }
 0x10a PF: > { %v447_v45 = vld [vmem:[%s1330_s2 + $0x78] sm:$0xff]  ;;  %v446_v46 = vld [vmem:[%s1330_s2 + $0x70] sm:$0xff]  ;;  %v445_v47 = vld [vmem:[%s1330_s2 + $0x68] sm:$0xff]  ;;  %s750_s19 = sshll.u32 %s969_s24, 3  ;;  %p751_p11 = scmp.ne.s32.totalorder %s969_s24, 1 }
 0x10b   : > { %448 = vmatpush.msra.mxu0 %v447_v45  ;;  %v444_v48 = vld [vmem:[%s1330_s2 + $0x60] sm:$0xff]  ;;  %v443_v49 = vld [vmem:[%s1330_s2 + $0x58] sm:$0xff]  ;;  %v442_v50 = vld [vmem:[%s1330_s2 + $0x50] sm:$0xff]  ;;  %s419_s14 = scalar_lea.vmem [#allocation2], %s750_s19 }
 0x10c   : > { %v441_v51 = vld [vmem:[%s1330_s2 + $0x48] sm:$0xff]  ;;  %v440_v52 = vld [vmem:[%s1330_s2 + $0x40] sm:$0xff]  ;;  %v439_v53 = vld [vmem:[%s1330_s2 + $0x38] sm:$0xff] }
 0x10d   : > { %449 = vmatpush.msra.mxu0 %v446_v46  ;;  %v438_v54 = vld [vmem:[%s1330_s2 + $0x30] sm:$0xff]  ;;  %v844_v55 = vld [vmem:[#allocation3] ss:$0 sm:$0xff]  ;;  %v420_v56 = vld [vmem:[%s419_s14] sm:$0xff] }
 0x10e   : > { %v437_v57 = vld [vmem:[%s1330_s2 + $0x28] sm:$0xff]  ;;  %v436_v58 = vld [vmem:[%s1330_s2 + $0x20] sm:$0xff]  ;;  %v425_v59 = vmul.f32 %v844_v55, %v420_v56  ;;  %v845_v60 = vld [vmem:[#allocation4] ss:$0 sm:$0xff] }
 0x10f   : > { %450 = vmatpush.msra.mxu0 %v445_v47  ;;  %v435_v61 = vld [vmem:[%s1330_s2 + $0x18] sm:$0xff]  ;;  %v434_v62 = vld [vmem:[%s1330_s2 + $0x10] sm:$0xff]  ;;  %v433_v0 = vld [vmem:[%s1330_s2 + $0x8] sm:$0xff] }
 0x110   : > { %v430_v63 = vadd.f32 %v845_v60, %v425_v59  ;;  %v432_v1 = vld [vmem:[%s1330_s2] sm:$0xff]  ;;  %v468_v14 = vld [vmem:[#allocation5] sm:$0x1]  ;;  %v477_v17 = vld [vmem:[#allocation6] sm:$0x1] }
 0x111   : > { %451 = vmatpush.msra.mxu0 %v444_v48 }
 0x112   : > { %v431_v2 = vmax.f32 %v430_v63, 0.0 }
 0x113   : > { %452 = vmatpush.msra.mxu0 %v443_v49 }
 0x115   : > { %453 = vmatpush.msra.mxu0 %v442_v50 }
 0x117   : > { %454 = vmatpush.msra.mxu0 %v441_v51 }
 0x119   : > { %455 = vmatpush.msra.mxu0 %v440_v52 }
 0x11b   : > { %456 = vmatpush.msra.mxu0 %v439_v53 }
 0x11d   : > { %457 = vmatpush.msra.mxu0 %v438_v54 }
 0x11f   : > { %458 = vmatpush.msra.mxu0 %v437_v57 }
 0x121   : > { %459 = vmatpush.msra.mxu0 %v436_v58 }
 0x123   : > { %460 = vmatpush.msra.mxu0 %v435_v61 }
 0x125   : > { %461 = vmatpush.msra.mxu0 %v434_v62 }
 0x127   : > { %462 = vmatpush.msra.mxu0 %v433_v0 }
 0x129   : > { %463 = vmatpush.msra.mxu0 %v432_v1 }
 0x12a   : > { %464 = vmatmul.f32.vlgmr.msra.gmra.mxu0 %v431_v2 }
 0x1a7   : > { %v465_v3 = vpop.f32.mrf.mxu0 }
 0x1a8   : > { %v469_v4 = vrot.slane %v465_v3, 4  ;;  %v478_v5 = vmul.f32 %v465_v3, %v465_v3 }
 0x1aa   : > { %v470_v6 = vadd.f32 %v469_v4, %v465_v3  ;;  %v479_v7 = vrot.slane %v478_v5, 4 }
 0x1ac   : > { %v471_v8 = vrot.slane %v470_v6, 2  ;;  %v480_v9 = vadd.f32 %v479_v7, %v478_v5 }
 0x1ae   : > { %v472_v10 = vadd.f32 %v471_v8, %v470_v6  ;;  %v481_v11 = vrot.slane %v480_v9, 2 }
 0x1b0   : > { %v473_v12 = vrot.slane %v472_v10, 1  ;;  %v482_v13 = vadd.f32 %v481_v11, %v480_v9 }
 0x1b2   : > { %v474_v15 = vadd.f32 %v473_v12, %v472_v10  ;;  %v483_v16 = vrot.slane %v482_v13, 1 }
 0x1b4   : > { %v475_v18 = vadd.f32 %v474_v15, %v468_v14  ;;  %v484_v19 = vadd.f32 %v483_v16, %v482_v13  ;;  %490 = sbr.rel (%p751_p11) target bundleno = 493 (0x1ed), region = 76 }
 0x1b6   : > { %476 = vst [vmem:[#allocation5] sm:$0x1] %v475_v18  ;;  %v485_v20 = vadd.f32 %v484_v19, %v477_v17 }
 0x1b8   : > { %486 = vst [vmem:[#allocation6] sm:$0x1] %v485_v20 }
 0x1b9   : > { %v491_v35 = vld [vmem:[%s1332_s4] sm:$0xf] }
 0x1bd   : > { %v492_v21 = vld [vmem:[#allocation5] sm:$0x1] }
 0x1be   : > { %v493_v23 = vmul.f32 0.0625, %v492_v21 }
 0x1bf   : > { %v494_v22 = vld [vmem:[#allocation6] sm:$0x1] }
 0x1c0   : > { %v495_v24 = vmul.f32 0.0625, %v494_v22  ;;  %v496_v25 = vmul.f32 %v493_v23, %v493_v23 }
 0x1c2   : > { %v497_v26 = vsub.f32 %v495_v24, %v496_v25 }
 0x1c4   : > { %v498_v27 = vmax.f32 %v497_v26, 0.0 }
 0x1c6   : > { %v499_v28 = vadd.f32 1e-05, %v498_v27 }
 0x1c8   : > { %846 = vrsqrt.f32 %v499_v28  ;;  %vm506_vm4 = vweird.f32 %v499_v28 }
 0x1ce   : > { %v847_v29 = vpop.eup %846 }
 0x1cf   : > { %v501_v30 = vmul.f32 %v847_v29, %v499_v28  ;;  %vm507_vm5 = vweird.f32 %v847_v29 }
 0x1d0   : > { %vm508_vm6 = vmor %vm506_vm4, %vm507_vm5 }
 0x1d1   : > { %v502_v31 = vmul.f32 %v847_v29, %v501_v30 }
 0x1d3   : > { %v503_v32 = vmul.f32 0.5, %v502_v31 }
 0x1d5   : > { %v504_v33 = vsub.f32 1.5, %v503_v32 }
 0x1d7   : > { %v505_v34 = vmul.f32 %v847_v29, %v504_v33 }
 0x1d9   : > { %v509_v36 = vsel %vm508_vm6, %v847_v29, %v505_v34 }
 0x1da   : > { %v511_v37 = vperm.slane %v509_v36, 0 }
 0x1dc   : > { %v513_v38 = vmul.f32 %v511_v37, %v491_v35 }
 0x1de   : > { %516 = vst [vmem:[#allocation1] sm:$0xff] %v513_v38 }
 0x1df   : > { %514 = vst [vmem:[#allocation5 - $0x2] sm:$0x4] %v513_v38 }
 0x1e5   : > { %v518_v39 = vld [vmem:[#allocation1 + $0x2] ss:$9 sm:$0xff] }
 0x1e6   : > { %v520_v40 = vmul.f32 %v518_v39, %v493_v23 }
 0x1e8   : > { %v522_v41 = vperm.slane %v520_v40, 0 }
 0x1ea   : > { %v524_v42 = vsub.f32 %v491_v35, %v522_v41 }
 0x1ec   : > { %525 = vst [vmem:[#allocation6 - $0x3] sm:$0x8] %v524_v42 }
 0x1ed PF: > { %p752_p12 = scmp.ne.s32.totalorder %s973_s25, 2 }
 0x1ee   : > { %s753_s14 = sshll.u32 (!%p752_p12), %s969_s24, 3 }
 0x1ef   : > { %529 = sbr.rel (%p752_p12) target bundleno = 800 (0x320), region = 80  ;;  %s531_s20 = scalar_lea.vmem (!%p752_p12), [#allocation2], %s753_s14 }
 0x1f4   : > { %v559_v43 = vld [vmem:[%s1330_s2 + $0x78] sm:$0xff]  ;;  %v558_v44 = vld [vmem:[%s1330_s2 + $0x70] sm:$0xff]  ;;  %v557_v45 = vld [vmem:[%s1330_s2 + $0x68] sm:$0xff]  ;;  %vm632_vm7 = vcmask 64512  }
 0x1f5   : > { %560 = vmatpush.msra.mxu0 %v559_v43  ;;  %v556_v46 = vld [vmem:[%s1330_s2 + $0x60] sm:$0xff]  ;;  %v555_v47 = vld [vmem:[%s1330_s2 + $0x58] sm:$0xff]  ;;  %v605_v49 = vld [vmem:[%s1331_s3 + $0x70] sm:$0xff] }
 0x1f6   : > { %v606_v48 = vld [vmem:[%s1331_s3 + $0x78] sm:$0xff]  ;;  %v554_v50 = vld [vmem:[%s1330_s2 + $0x50] sm:$0xff]  ;;  %v604_v51 = vld [vmem:[%s1331_s3 + $0x68] sm:$0xff] }
 0x1f7   : > { %561 = vmatpush.msra.mxu0 %v558_v44  ;;  %611 = vmatpush.msra.mxu1 %v606_v48  ;;  %v553_v52 = vld [vmem:[%s1330_s2 + $0x48] sm:$0xff]  ;;  %v603_v53 = vld [vmem:[%s1331_s3 + $0x60] sm:$0xff]  ;;  %v602_v55 = vld [vmem:[%s1331_s3 + $0x58] sm:$0xff] }
 0x1f8   : > { %v552_v54 = vld [vmem:[%s1330_s2 + $0x40] sm:$0xff]  ;;  %v551_v56 = vld [vmem:[%s1330_s2 + $0x38] sm:$0xff]  ;;  %v601_v57 = vld [vmem:[%s1331_s3 + $0x50] sm:$0xff] }
 0x1f9   : > { %562 = vmatpush.msra.mxu0 %v557_v45  ;;  %612 = vmatpush.msra.mxu1 %v605_v49  ;;  %v550_v58 = vld [vmem:[%s1330_s2 + $0x30] sm:$0xff]  ;;  %v848_v59 = vld [vmem:[#allocation3] ss:$0 sm:$0xff]  ;;  %v532_v60 = vld [vmem:[%s531_s20] sm:$0xff] }
 0x1fa   : > { %v600_v61 = vld [vmem:[%s1331_s3 + $0x48] sm:$0xff]  ;;  %v599_v63 = vld [vmem:[%s1331_s3 + $0x40] sm:$0xff]  ;;  %v537_v1 = vmul.f32 %v848_v59, %v532_v60  ;;  %v849_v2 = vld [vmem:[#allocation4] ss:$0 sm:$0xff] }
 0x1fb   : > { %563 = vmatpush.msra.mxu0 %v556_v46  ;;  %613 = vmatpush.msra.mxu1 %v604_v51  ;;  %v549_v62 = vld [vmem:[%s1330_s2 + $0x28] sm:$0xff]  ;;  %v548_v0 = vld [vmem:[%s1330_s2 + $0x20] sm:$0xff]  ;;  %v598_v3 = vld [vmem:[%s1331_s3 + $0x38] sm:$0xff] }
 0x1fc   : > { %v547_v4 = vld [vmem:[%s1330_s2 + $0x18] sm:$0xff]  ;;  %v597_v5 = vld [vmem:[%s1331_s3 + $0x30] sm:$0xff]  ;;  %v542_v7 = vadd.f32 %v849_v2, %v537_v1  ;;  %v596_v8 = vld [vmem:[%s1331_s3 + $0x28] sm:$0xff] }
 0x1fd   : > { %564 = vmatpush.msra.mxu0 %v555_v47  ;;  %614 = vmatpush.msra.mxu1 %v603_v53  ;;  %v546_v6 = vld [vmem:[%s1330_s2 + $0x10] sm:$0xff]  ;;  %v545_v9 = vld [vmem:[%s1330_s2 + $0x8] sm:$0xff]  ;;  %v595_v10 = vld [vmem:[%s1331_s3 + $0x20] sm:$0xff] }
 0x1fe   : > { %v544_v11 = vld [vmem:[%s1330_s2] sm:$0xff]  ;;  %v543_v12 = vmax.f32 %v542_v7, 0.0  ;;  %v594_v13 = vld [vmem:[%s1331_s3 + $0x18] sm:$0xff]  ;;  %v593_v14 = vld [vmem:[%s1331_s3 + $0x10] sm:$0xff] }
 0x1ff   : > { %565 = vmatpush.msra.mxu0 %v554_v50  ;;  %615 = vmatpush.msra.mxu1 %v602_v55  ;;  %v592_v15 = vld [vmem:[%s1331_s3 + $0x8] sm:$0xff]  ;;  %v591_v16 = vld [vmem:[%s1331_s3] sm:$0xff]  ;;  %v850_v17 = vld [vmem:[#allocation5] ss:$0 sm:$0xff] }
 0x200   : > { %v851_v18 = vld [vmem:[#allocation6] ss:$0 sm:$0xff]  ;;  %v852_v23 = vld [vmem:[%s1333_s5] ss:$0 sm:$0xff] }
 0x201   : > { %566 = vmatpush.msra.mxu0 %v553_v52  ;;  %616 = vmatpush.msra.mxu1 %v601_v57 }
 0x203   : > { %567 = vmatpush.msra.mxu0 %v552_v54  ;;  %617 = vmatpush.msra.mxu1 %v600_v61 }
 0x205   : > { %568 = vmatpush.msra.mxu0 %v551_v56  ;;  %618 = vmatpush.msra.mxu1 %v599_v63 }
 0x207   : > { %569 = vmatpush.msra.mxu0 %v550_v58  ;;  %619 = vmatpush.msra.mxu1 %v598_v3 }
 0x209   : > { %570 = vmatpush.msra.mxu0 %v549_v62  ;;  %620 = vmatpush.msra.mxu1 %v597_v5 }
 0x20b   : > { %571 = vmatpush.msra.mxu0 %v548_v0  ;;  %621 = vmatpush.msra.mxu1 %v596_v8 }
 0x20d   : > { %572 = vmatpush.msra.mxu0 %v547_v4  ;;  %622 = vmatpush.msra.mxu1 %v595_v10 }
 0x20f   : > { %573 = vmatpush.msra.mxu0 %v546_v6  ;;  %623 = vmatpush.msra.mxu1 %v594_v13 }
 0x211   : > { %574 = vmatpush.msra.mxu0 %v545_v9  ;;  %624 = vmatpush.msra.mxu1 %v593_v14 }
 0x213   : > { %575 = vmatpush.msra.mxu0 %v544_v11  ;;  %625 = vmatpush.msra.mxu1 %v592_v15 }
 0x214   : > { %576 = vmatmul.f32.vlgmr.msra.gmra.mxu0 %v543_v12 }
 0x215   : > { %626 = vmatpush.msra.mxu1 %v591_v16 }
 0x291   : > { %v577_v19 = vpop.f32.mrf.mxu0 }
 0x292   : > { %v584_v20 = vmul.f32 %v850_v17, %v577_v19 }
 0x294   : > { %v589_v21 = vadd.f32 %v851_v18, %v584_v20 }
 0x296   : > { %v590_v22 = vmax.f32 %v589_v21, 0.0 }
 0x298   : > { %627 = vmatmul.f32.vlgmr.msra.gmra.mxu1 %v590_v22 }
 0x315   : > { %v628_v24 = vpop.f32.mrf.mxu1 }
 0x316   : > { %v629_v25 = vadd.f32 %v852_v23, %v628_v24 }
 0x318   : > { %853 = vtanh.f32 %v629_v25 }
 0x31e   : > { %v854_v26 = vpop.eup %853 }
 0x31f   : > { %633 = vst.msk [vmem:[%s1138_s18] sm:$0xff] %vm632_vm7, %v854_v26 }
 0x320 PF: > { %s20_s28 = sadd.s32 1, %s985_s28   ;;  %s1347_s24 = sld [smem:[#allocation13_spill]] }
 0x321   : > { %p17_p13 = scmp.ge.s32.totalorder %s20_s28, 8   ;;  %s1348_s25 = sld [smem:[#allocation14_spill]] }
 0x322   : > { %s1349_s27 = sld [smem:[#allocation15_spill]]  ;;  %s1350_s21 = smov %s961_s22 }
 0x323   : > { %s1351_s22 = smov %s965_s23  ;;  %s1352_s23 = smov %s1118_s16 }
 0x324   : > { %s1353_s26 = smov %s1355_s15  ;;  %19 = sbr.rel (!%p17_p13) target bundleno = 8 (0x8), region = 120 }
 0x329   :  { %659 = vsyncpa [#allocation8], 1 }
 0x32a   :  { %661 = vsyncpa [#allocation8 + $0x1], 1 }
 0x32b   :  { %662 = vsyncpa [#allocation10], 1 }

</bundles_post_ra>
